<compile_context>
chip_gen: v7x
topology: tpu7x:2x2x1
jax: 0.10.0
libtpu: 0.0.40
codegen_flags: <defaults>
</compile_context>

<pallas_src>
import jax
import jax.numpy as jnp
from jax.experimental import pallas as pl
from jax.experimental.pallas import tpu as pltpu

EPS = 1e-6


def tran_final_layer_kernel(x_ref, w1_ref, b1_ref, w2p_ref, scal_ref, o_ref):
    # --- Linear 1 + ReLU (MXU, f32 accumulate; x / W1 may be bf16) ---
    h = jnp.dot(x_ref[...], w1_ref[...], preferred_element_type=jnp.float32)
    h = jnp.maximum(h + b1_ref[...], 0.0)                        # (TM, H) f32

    # --- Single fused pass over h: three lane reductions (XLU slot) ---
    Hdim = h.shape[-1]
    s1 = jnp.sum(h, axis=-1, keepdims=True)                      # sum h
    s2 = jnp.sum(h * h, axis=-1, keepdims=True)                  # sum h^2
    sw = jnp.sum(h * w2p_ref[...], axis=-1, keepdims=True)       # sum h*(gamma*w2)

    mean = s1 * (1.0 / Hdim)
    # Unbiased (N-1) variance; clamp against cancellation round-off.
    var = jnp.maximum(s2 - s1 * mean, 0.0) * (1.0 / (Hdim - 1))
    std = jnp.sqrt(var)
    inv = pl.reciprocal(std + EPS, approx=True)                  # (TM, 1), EUP

    # y = sum_j((h_j - mean) * gamma_j * w2_j) / (std+eps) + (beta@w2 + c2)
    #   = (sum(h*w2p) - mean*sum(w2p)) * inv + c2p
    y = (sw - mean * scal_ref[1]) * inv + scal_ref[0]
    o_ref[...] = jax.nn.sigmoid(y)                               # (TM, 1)


def tran_final_layer(x, w1, b1, gamma, beta, w2, c2, *,
                     compute_dtype=jnp.bfloat16, tile_m=None, core_parallel=False):
    """x: (batch, seq, d_model); w1: (D, H) = W1^T; w2: (H, 1) = W2^T -> (batch, seq)."""
    B, S, D = x.shape
    H = w1.shape[1]
    M = B * S

    x2d = x.reshape(M, D).astype(compute_dtype)
    w1c = w1.astype(compute_dtype)
    b1r = b1.reshape(1, H).astype(jnp.float32)

    # Fold LayerNorm affine + second linear: one per-feature vector + two scalars.
    w2p = (gamma * w2[:, 0]).astype(jnp.float32).reshape(1, H)      # gamma * w2
    c2p = (beta @ w2[:, 0] + c2[0]).astype(jnp.float32)             # beta @ w2 + c2
    sw2p = jnp.sum(w2p).astype(jnp.float32)                         # sum(gamma * w2)
    scal = jnp.stack([c2p, sw2p])                                   # (2,) SMEM scalars

    # --- VMEM-aware tile sizing (128 MiB v5e/v6e, 64 MiB per-core v7x) ---
    xbytes = jnp.dtype(compute_dtype).itemsize
    try:
        vmem_cap = int(pltpu.get_tpu_info().vmem_capacity_bytes)
    except Exception:
        vmem_cap = 64 * 1024 * 1024            # conservative fallback: v7x per-core VMEM
    vmem_budget = int(vmem_cap * 0.70)         # headroom for compiler scratch / spills
    # Resident operands are double-buffered by default (constant index_map).
    weight_bytes = 2 * (D * H * xbytes + 2 * H * 4)
    # Per output row: x double-buffer + out double-buffer + ~2 (row,H) f32 temps.
    per_row = 2 * D * xbytes + 2 * 4 + 2 * H * 4
    tm_cap = max(512, (vmem_budget - weight_bytes) // per_row)

    if tile_m is None:
        tile_m = 32768          # small-D workloads are pure bandwidth+overhead: go big
    tm = int(min(tile_m, tm_cap))
    if tm >= M:
        tm = M                              # single block (block == full dim is legal)
    else:
        tm = max(8, (tm // 8) * 8)          # sublane-aligned; partial tail block is masked
    grid = (pl.cdiv(M, tm),)

    dim_sem = (pltpu.CORE_PARALLEL if core_parallel else pltpu.PARALLEL,)

    out = pl.pallas_call(
        tran_final_layer_kernel,
        out_shape=jax.ShapeDtypeStruct((M, 1), jnp.float32),
        grid=grid,
        in_specs=[
            pl.BlockSpec((tm, D), lambda i: (i, 0)),                # x: row-tiled
            pl.BlockSpec((D, H), lambda i: (0, 0)),                 # W1^T: resident
            pl.BlockSpec((1, H), lambda i: (0, 0)),                 # b1:   resident
            pl.BlockSpec((1, H), lambda i: (0, 0)),                 # gamma*w2: resident
            pl.BlockSpec(memory_space=pltpu.MemorySpace.SMEM),      # [c2p, sum(gamma*w2)]
        ],
        out_specs=pl.BlockSpec((tm, 1), lambda i: (i, 0)),
        compiler_params=pltpu.CompilerParams(
            dimension_semantics=dim_sem,
            vmem_limit_bytes=int(vmem_cap * 0.85),
        ),
    )(x2d, w1c, b1r, w2p, scal)

    return out[:, 0].reshape(B, S)


def reference(x, w1, b1, gamma, beta, w2, c2):
    h = jnp.maximum(x @ w1 + b1, 0.0)
    mean = jnp.mean(h, axis=-1, keepdims=True)
    std = jnp.sqrt(jnp.sum((h - mean) ** 2, axis=-1, keepdims=True) / (h.shape[-1] - 1))
    ln = gamma * (h - mean) / (std + EPS) + beta
    y = ln @ w2 + c2
    return jax.nn.sigmoid(y[..., 0])


if __name__ == "__main__":
    B, S, D = 2, 8, 32          # batch, seq, d_model
    H = D // 2                  # 16

    key = jax.random.PRNGKey(0)
    kx, k1, kb1, k2, kb2 = jax.random.split(key, 5)

    x = jax.random.normal(kx, (B, S, D), dtype=jnp.float32)

    # Deterministic parameter init (shapes per the module __init__).
    bound1 = 1.0 / (D ** 0.5)
    w1 = jax.random.uniform(k1, (D, H), minval=-bound1, maxval=bound1, dtype=jnp.float32)
    b1 = jax.random.uniform(kb1, (H,), minval=-bound1, maxval=bound1, dtype=jnp.float32)
    gamma = jnp.ones((H,), jnp.float32)
    beta = jnp.zeros((H,), jnp.float32)
    bound2 = 1.0 / (H ** 0.5)
    w2 = jax.random.uniform(k2, (H, 1), minval=-bound2, maxval=bound2, dtype=jnp.float32)
    c2 = jax.random.uniform(kb2, (1,), minval=-bound2, maxval=bound2, dtype=jnp.float32)

    out = tran_final_layer(x, w1, b1, gamma, beta, w2, c2)   # bf16 x / W1 stream
    jax.block_until_ready(out)

    ref = reference(x, w1, b1, gamma, beta, w2, c2)
    assert out.shape == (B, S), out.shape
    # bf16 input stream -> bf16-appropriate tolerance vs the f32 reference.
    # (Pass compute_dtype=jnp.float32 for tight f32 agreement.)
    assert jnp.allclose(out, ref, atol=2e-2, rtol=2e-2), "mismatch vs pure-JAX reference"

    print("KERNEL_OK")
</pallas_src>

<mosaic_0001>
module attributes {stable_mosaic.version = 11 : i64} {
  func.func @tran_final_layer_kernel(%arg0: i32, %arg1: memref<16x32xbf16, #tpu.memory_space<vmem>>, %arg2: memref<32x16xbf16, #tpu.memory_space<vmem>>, %arg3: memref<1x16xf32, #tpu.memory_space<vmem>>, %arg4: memref<1x16xf32, #tpu.memory_space<vmem>>, %arg5: memref<2xf32, #tpu.memory_space<smem>>, %arg6: memref<16x1xf32, #tpu.memory_space<vmem>>) attributes {dimension_semantics = [#tpu.dimension_semantics<parallel>], iteration_bounds = array<i64: 1>, scalar_prefetch = 0 : i64, scratch_operands = 0 : i64, tpu.core_type = #tpu.core_type<tc>, window_params = [{transform_indices = @transform_0, window_bounds = array<i64: 16, 32>}, {pipeline_mode = #tpu.pipeline_mode<synchronous>, transform_indices = @transform_1, window_bounds = array<i64: 32, 16>}, {pipeline_mode = #tpu.pipeline_mode<synchronous>, transform_indices = @transform_2, window_bounds = array<i64: 1, 16>}, {pipeline_mode = #tpu.pipeline_mode<synchronous>, transform_indices = @transform_3, window_bounds = array<i64: 1, 16>}, {transform_indices = @transform_4, window_bounds = array<i64: 2>}, {transform_indices = @transform_5, window_bounds = array<i64: 16, 1>}]} {
    %c0 = arith.constant 0 : index
    %c0_0 = arith.constant 0 : index
    %0 = vector.load %arg1[%c0, %c0_0] : memref<16x32xbf16, #tpu.memory_space<vmem>>, vector<16x32xbf16>
    %c0_1 = arith.constant 0 : index
    %c0_2 = arith.constant 0 : index
    %1 = vector.load %arg2[%c0_1, %c0_2] : memref<32x16xbf16, #tpu.memory_space<vmem>>, vector<32x16xbf16>
    %cst = arith.constant dense<0.000000e+00> : vector<16x16xf32>
    %2 = tpu.matmul %0, %1, %cst {dimension_numbers = #tpu.dot_dimension_numbers<[1], [0], [0], [1], [0, 0, 1, 1], [], []>} : vector<16x32xbf16>, vector<32x16xbf16>, vector<16x16xf32> -> vector<16x16xf32>
    %c0_3 = arith.constant 0 : index
    %c0_4 = arith.constant 0 : index
    %3 = vector.load %arg3[%c0_3, %c0_4] : memref<1x16xf32, #tpu.memory_space<vmem>>, vector<1x16xf32>
    %4 = vector.broadcast %3 : vector<1x16xf32> to vector<16x16xf32>
    %5 = arith.addf %2, %4 : vector<16x16xf32>
    %cst_5 = arith.constant 0.000000e+00 : f32
    %6 = vector.broadcast %cst_5 : f32 to vector<16x16xf32>
    %7 = arith.maximumf %5, %6 : vector<16x16xf32>
    %cst_6 = arith.constant dense<0.000000e+00> : vector<16xf32>
    %8 = vector.multi_reduction <add>, %7, %cst_6 [1] : vector<16x16xf32> to vector<16xf32>
    %9 = vector.shape_cast %8 : vector<16xf32> to vector<16x1xf32>
    %10 = arith.mulf %7, %7 : vector<16x16xf32>
    %cst_7 = arith.constant dense<0.000000e+00> : vector<16xf32>
    %11 = vector.multi_reduction <add>, %10, %cst_7 [1] : vector<16x16xf32> to vector<16xf32>
    %12 = vector.shape_cast %11 : vector<16xf32> to vector<16x1xf32>
    %c0_8 = arith.constant 0 : index
    %c0_9 = arith.constant 0 : index
    %13 = vector.load %arg4[%c0_8, %c0_9] : memref<1x16xf32, #tpu.memory_space<vmem>>, vector<1x16xf32>
    %14 = vector.broadcast %13 : vector<1x16xf32> to vector<16x16xf32>
    %15 = arith.mulf %7, %14 : vector<16x16xf32>
    %cst_10 = arith.constant dense<0.000000e+00> : vector<16xf32>
    %16 = vector.multi_reduction <add>, %15, %cst_10 [1] : vector<16x16xf32> to vector<16xf32>
    %17 = vector.shape_cast %16 : vector<16xf32> to vector<16x1xf32>
    %cst_11 = arith.constant 6.250000e-02 : f32
    %18 = vector.broadcast %cst_11 : f32 to vector<16x1xf32>
    %19 = arith.mulf %9, %18 : vector<16x1xf32>
    %20 = arith.mulf %9, %19 : vector<16x1xf32>
    %21 = arith.subf %12, %20 : vector<16x1xf32>
    %cst_12 = arith.constant 0.000000e+00 : f32
    %22 = vector.broadcast %cst_12 : f32 to vector<16x1xf32>
    %23 = arith.maximumf %21, %22 : vector<16x1xf32>
    %cst_13 = arith.constant 0.0666666701 : f32
    %24 = vector.broadcast %cst_13 : f32 to vector<16x1xf32>
    %25 = arith.mulf %23, %24 : vector<16x1xf32>
    %26 = math.sqrt %25 : vector<16x1xf32>
    %cst_14 = arith.constant 9.99999997E-7 : f32
    %27 = vector.broadcast %cst_14 : f32 to vector<16x1xf32>
    %28 = arith.addf %26, %27 : vector<16x1xf32>
    %29 = tpu.reciprocal %28 {approx = true} : vector<16x1xf32> -> vector<16x1xf32>
    %c1 = arith.constant 1 : index
    %30 = memref.load %arg5[%c1] : memref<2xf32, #tpu.memory_space<smem>>
    %31 = vector.broadcast %30 : f32 to vector<16x1xf32>
    %32 = arith.mulf %19, %31 : vector<16x1xf32>
    %33 = arith.subf %17, %32 : vector<16x1xf32>
    %34 = arith.mulf %33, %29 : vector<16x1xf32>
    %c0_15 = arith.constant 0 : index
    %35 = memref.load %arg5[%c0_15] : memref<2xf32, #tpu.memory_space<smem>>
    %36 = vector.broadcast %35 : f32 to vector<16x1xf32>
    %37 = arith.addf %34, %36 : vector<16x1xf32>
    %38 = arith.negf %37 : vector<16x1xf32>
    %39 = math.exp %38 : vector<16x1xf32>
    %cst_16 = arith.constant 1.000000e+00 : f32
    %40 = vector.broadcast %cst_16 : f32 to vector<16x1xf32>
    %41 = arith.addf %40, %39 : vector<16x1xf32>
    %42 = arith.divf %40, %41 : vector<16x1xf32>
    %c0_17 = arith.constant 0 : index
    %c0_18 = arith.constant 0 : index
    %43 = vector.load %arg6[%c0_17, %c0_18] : memref<16x1xf32, #tpu.memory_space<vmem>>, vector<16x1xf32>
    tpu.vector_store %arg6[%c0_17, %c0_18], %42 {strides = array<i32>} : memref<16x1xf32, #tpu.memory_space<vmem>>, vector<16x1xf32>,
    return
  }
  func.func @transform_0(%arg0: i32) -> (i32, i32) {
    %c0_i32 = arith.constant 0 : i32
    %c0_i32_0 = arith.constant 0 : i32
    return %arg0, %c0_i32 : i32, i32
  }
  func.func @transform_1(%arg0: i32) -> (i32, i32) {
    %c0_i32 = arith.constant 0 : i32
    %c0_i32_0 = arith.constant 0 : i32
    %c0_i32_1 = arith.constant 0 : i32
    return %c0_i32, %c0_i32_0 : i32, i32
  }
  func.func @transform_2(%arg0: i32) -> (i32, i32) {
    %c0_i32 = arith.constant 0 : i32
    %c0_i32_0 = arith.constant 0 : i32
    %c0_i32_1 = arith.constant 0 : i32
    return %c0_i32, %c0_i32_0 : i32, i32
  }
  func.func @transform_3(%arg0: i32) -> (i32, i32) {
    %c0_i32 = arith.constant 0 : i32
    %c0_i32_0 = arith.constant 0 : i32
    %c0_i32_1 = arith.constant 0 : i32
    return %c0_i32, %c0_i32_0 : i32, i32
  }
  func.func @transform_4(%arg0: i32) -> i32 {
    %c0_i32 = arith.constant 0 : i32
    %c0_i32_0 = arith.constant 0 : i32
    return %c0_i32 : i32
  }
  func.func @transform_5(%arg0: i32) -> (i32, i32) {
    %c0_i32 = arith.constant 0 : i32
    %c0_i32_0 = arith.constant 0 : i32
    return %arg0, %c0_i32 : i32, i32
  }
}

</mosaic_0001>

<bundles_post_ra>
// kernel: tpu_custom_call.1
= control target key start
LH: loop header
LB: loop body
LE: loop exit
PB: predicated region body
PF: predicated region fallthrough
CT: control target
= control target key end

     0   :  { %10 = vsyncpa [#allocation3], 0  ;;  %s320_s0 = inlined_call_operand.vmem [shape: bf16[16,32], index: 0, kind: input, shape index: {}]   ;;  %s321_s1 = inlined_call_operand.vmem [shape: bf16[32,16], index: 1, kind: input, shape index: {}]   ;;  %s322_s2 = inlined_call_operand.vmem [shape: f32[1,16], index: 2, kind: input, shape index: {}]   ;;  %s323_s3 = inlined_call_operand.vmem [shape: f32[1,16], index: 3, kind: input, shape index: {}]   ;;  %s324_s4 = inlined_call_operand.vmem [shape: f32[2], index: 4, kind: input, shape index: {}]   ;;  %s325_s5 = inlined_call_operand.vmem [shape: f32[16,1], index: 5, kind: output, shape index: {}]  }
   0x1   :  { %s25_s20 = sshll.u32 %s324_s4, 4  ;;  %s26_s20 = int_to_ptr.vmem [resolvable:$true] %s25_s20 }
   0x2   :  { %s243_s21 = scalar_lea.vmem %s26_s20, 16  ;;  %p248_p1 = scmp.lt.s32.totalorder %s26_s20, %s26_s20 }
   0x3   :  { %p244_p0 = scmp.ne.s32.totalorder %s26_s20, %s243_s21  ;;  %p249_p2 = scmp.lt.s32.totalorder %s243_s21, %s243_s21 }
   0x5   :  { %p250_p3 = por %p249_p2, %p248_p1 }
   0x7   :  { %p251_p4 = pnand %p250_p3, %p244_p0 }
   0x9   :  { %254 = shalt.err (!%p251_p4)
}
   0xa   :  { %s257_s22 = smov [#allocation2]  }
   0xb   :  { %28 = dma.vmem_to_smem %s26_s20, 16, %s257_s22, [#allocation3]  }
   0xc   :  { %255 = dma.done.wait [#allocation3], 16  }
   0xd   :  { %256 = vsyncadd [#allocation3], 4294967280 }
   0xe   :  { %32 = sfence }
   0xf   :  { %v224_v0 = vld [vmem:[%s321_s1] sm:$0xff]   ;;  %v258_v1 = vmov 0.0   ;;  %v225_v2 = vld [vmem:[%s321_s1 + $0x8] sm:$0xff]   ;;  %vm259_vm0 = vmmov 0   ;;  %vm64_vm1 = vcmask 261120   ;;  %vm111_vm2 = vcmask 130048  }
  0x10   :  { %213 = vmatprep.subr.bf16.mxu0 %v258_v1  ;;  %217 = vmatprep.mubr.msk.bf16.mxu0 %vm259_vm0, %v258_v1  ;;  %v226_v3 = vld [vmem:[%s320_s0] sm:$0xff]   ;;  %vm193_vm7 = vcmask 7168  }
  0x11   :  { %214 = vmatpush3.bf16.msra.mxu0 %v224_v0  ;;  %v201_v4 = vld [vmem:[%s322_s2] ss:$0 sm:$0xff]  ;;  %s207_s2 = sld [smem:[#allocation2 + $0x1]] }
  0x12   :  { %215 = vmatprep.subr.bf16.mxu0 %v258_v1  ;;  %v206_v15 = vld [vmem:[%s323_s3] ss:$0 sm:$0xff]  ;;  %s177_s3 = sld [smem:[#allocation2]] }
  0x15   :  { %216 = vmatpush3.bf16.msra.mxu0 %v225_v2 }
  0x17   :  { %v170_v50 = vstv %s207_s2 }
  0x18   :  { %218 = vmatmul.mubr.msk.bf16.vlgmr.msra.gmra.mrb[0].mxu0 %vm64_vm1, %v226_v3  ;;  %v178_v55 = vstv %s177_s3 }
  0xeb   :  { %v102_v5 = vpop.f32.mrb[0].mxu0 }
  0xec   :  { %v103_v6 = vadd.f32 %v201_v4, %v102_v5  ;;  %v219_v7 = vpop.f32.mrb[1].mxu0 }
  0xed   :  { %v105_v8 = vpop.f32.mrb[2].mxu0 }
  0xee   :  { %v109_v9 = vmax.f32 %v103_v6, 0.0  ;;  %v106_v10 = vadd.f32 %v201_v4, %v105_v8  ;;  %v220_v11 = vpop.f32.mrb[3].mxu0 }
  0xf0   :  { %v110_v12 = vmax.f32 %v106_v10, 0.0  ;;  %v112_v13 = vsel %vm111_vm2, %v109_v9, 0.0  ;;  %v118_v14 = vmul.f32 %v109_v9, %v109_v9  ;;  %v133_v19 = vmul.f32 %v206_v15, %v109_v9 }
  0xf1   :  { %113 = vadd.xlane.f32.xlu0 %v112_v13 }
  0xf2   :  { %v120_v16 = vsel %vm111_vm2, %v118_v14, 0.0  ;;  %v119_v17 = vmul.f32 %v110_v12, %v110_v12  ;;  %v115_v18 = vsel %vm111_vm2, %v110_v12, 0.0  ;;  %v134_v21 = vmul.f32 %v206_v15, %v110_v12 }
  0xf3   :  { %121 = vadd.xlane.f32.xlu1 %v120_v16  ;;  %v135_v22 = vsel %vm111_vm2, %v133_v19, 0.0 }
  0xf4   :  { %v123_v20 = vsel %vm111_vm2, %v119_v17, 0.0  ;;  %v138_v23 = vsel %vm111_vm2, %v134_v21, 0.0 }
  0xf5   :  { %116 = vadd.xlane.f32.xlu0 %v115_v18 }
  0xf7   :  { %124 = vadd.xlane.f32.xlu1 %v123_v20 }
  0xf9   :  { %136 = vadd.xlane.f32.xlu0 %v135_v22 }
  0xfb   :  { %139 = vadd.xlane.f32.xlu1 %v138_v23 }
 0x17e   :  { %v114_v24 = vpop.xlane.xlu0 %113 }
 0x17f   :  { %v141_v25 = vmul.f32 0.0625, %v114_v24 }
 0x180   :  { %v122_v26 = vpop.xlane.xlu1 %121 }
 0x181   :  { %v143_v27 = vmul.f32 %v141_v25, %v114_v24  ;;  %v171_v52 = vmul.f32 %v170_v50, %v141_v25 }
 0x182   :  { %v117_v28 = vpop.xlane.xlu0 %116 }
 0x183   :  { %v145_v29 = vsub.f32 %v122_v26, %v143_v27  ;;  %v142_v30 = vmul.f32 0.0625, %v117_v28 }
 0x184   :  { %v125_v33 = vpop.xlane.xlu1 %124 }
 0x185   :  { %v147_v31 = vmax.f32 %v145_v29, 0.0  ;;  %v144_v32 = vmul.f32 %v142_v30, %v117_v28  ;;  %v172_v58 = vmul.f32 %v170_v50, %v142_v30 }
 0x186   :  { %v137_v51 = vpop.xlane.xlu0 %136 }
 0x187   :  { %v149_v34 = vmul.f32 0.06666667, %v147_v31  ;;  %v146_v35 = vsub.f32 %v125_v33, %v144_v32  ;;  %v173_v53 = vsub.f32 %v137_v51, %v171_v52 }
 0x188   :  { %v140_v56 = vpop.xlane.xlu1 %139 }
 0x189   :  { %227 = vrsqrt.f32 %v149_v34  ;;  %v148_v36 = vmax.f32 %v146_v35, 0.0  ;;  %vm153_vm3 = vcmp.eq.f32.partialorder %v149_v34, inf  ;;  %v156_v40 = vand.u32 2147483648, %v149_v34 }
 0x18a   :  { %vm155_vm4 = vcmp.eq.f32.partialorder %v149_v34, 0.0  ;;  %v174_v60 = vsub.f32 %v140_v56, %v172_v58 }
 0x18b   :  { %v150_v37 = vmul.f32 0.06666667, %v148_v36 }
 0x18d   :  { %229 = vrsqrt.f32 %v150_v37  ;;  %vm160_vm5 = vcmp.eq.f32.partialorder %v150_v37, inf  ;;  %v163_v46 = vand.u32 2147483648, %v150_v37  ;;  %vm162_vm6 = vcmp.eq.f32.partialorder %v150_v37, 0.0 }
 0x193   :  { %v228_v38 = vpop.eup %227 }
 0x194   :  { %v152_v39 = vmul.f32 %v228_v38, %v149_v34 }
 0x196   :  { %v154_v41 = vsel %vm153_vm3, %v149_v34, %v152_v39 }
 0x197   :  { %v230_v42 = vpop.eup %229  ;;  %v157_v43 = vsel %vm155_vm4, %v156_v40, %v154_v41 }
 0x198   :  { %v159_v44 = vmul.f32 %v230_v42, %v150_v37  ;;  %v165_v45 = vadd.f32 1e-06, %v157_v43 }
 0x19a   :  { %231 = vrcp.f32 %v165_v45  ;;  %v161_v47 = vsel %vm160_vm5, %v150_v37, %v159_v44 }
 0x19b   :  { %v164_v48 = vsel %vm162_vm6, %v163_v46, %v161_v47 }
 0x19c   :  { %v166_v49 = vadd.f32 1e-06, %v164_v48 }
 0x19e   :  { %233 = vrcp.f32 %v166_v49 }
 0x1a4   :  { %v232_v54 = vpop.eup %231 }
 0x1a5   :  { %v175_v57 = vmul.f32 %v232_v54, %v173_v53 }
 0x1a7   :  { %v179_v59 = vadd.f32 %v178_v55, %v175_v57 }
 0x1a8   :  { %v234_v61 = vpop.eup %233 }
 0x1a9   :  { %v208_v62 = vmul.f32 -1.442695, %v179_v59  ;;  %v176_v63 = vmul.f32 %v234_v61, %v174_v60 }
 0x1ab   :  { %235 = vpow2.f32 %v208_v62  ;;  %v180_v0 = vadd.f32 %v178_v55, %v176_v63 }
 0x1ad   :  { %v209_v1 = vmul.f32 -1.442695, %v180_v0 }
 0x1af   :  { %237 = vpow2.f32 %v209_v1 }
 0x1b5   :  { %v236_v2 = vpop.eup %235 }
 0x1b6   :  { %v187_v3 = vadd.f32 1.0, %v236_v2 }
 0x1b8   :  { %239 = vrcp.f32 %v187_v3 }
 0x1b9   :  { %v238_v4 = vpop.eup %237 }
 0x1ba   :  { %v188_v5 = vadd.f32 1.0, %v238_v4 }
 0x1bc   :  { %241 = vrcp.f32 %v188_v5 }
 0x1c2   :  { %v240_v6 = vpop.eup %239 }
 0x1c3   :  { %194 = vst.msk [vmem:[%s325_s5] sm:$0xff] %vm193_vm7, %v240_v6 }
 0x1c6   :  { %v242_v7 = vpop.eup %241 }
 0x1c7   :  { %195 = vst.msk [vmem:[%s325_s5 + $0x8] sm:$0xff] %vm193_vm7, %v242_v7 }
 0x1c8   :  { %200 = vsyncpa [#allocation3], 1 }

</bundles_post_ra>
